<compile_context>
chip_gen: v5e
topology: v5e:2x2
jax: 0.10.0
libtpu: 0.0.40
codegen_flags: <defaults>
</compile_context>

<pallas_src>
import functools

import jax
import jax.numpy as jnp
from jax.experimental import pallas as pl
from jax.experimental.pallas import tpu as pltpu


def _self_attention_kernel(x_ref, wqkv_ref, bqkv_ref, o_ref, ctx_ref,
                           *, num_heads, head_dim):
    """One batch element per grid step.

    x_ref    : (1, S, H)   activations (f32, or bf16 on the MXU fast path)
    wqkv_ref : (H, 3H)     packed [Wq.T | Wk.T | Wv.T], same dtype as x
    bqkv_ref : (1, 3H)     packed [bq | bk | bv], f32
    o_ref    : (1, S, H)   output, original activation dtype
    ctx_ref  : (S, H) f32  VMEM scratch slab for the merged-head context
    """
    H = num_heads * head_dim
    x = x_ref[0]                                    # (S, H)
    mxu_dtype = x.dtype                             # bf16 on v6e/v7x fast path
    scale = float(head_dim) ** -0.5

    # Fused QKV projection: one wide MXU matmul, f32 accumulation, f32 bias.
    qkv = jnp.dot(x, wqkv_ref[...],
                  preferred_element_type=jnp.float32) + bqkv_ref[...]

    # Fold 1/sqrt(d) into Q once instead of scaling every score matrix.
    q = (qkv[:, 0 * H:1 * H] * scale).astype(mxu_dtype)
    k = qkv[:, 1 * H:2 * H].astype(mxu_dtype)
    v = qkv[:, 2 * H:3 * H].astype(mxu_dtype)

    # Contract head_dim of Q against head_dim of K directly (A @ B^T on the
    # MXU) -- no explicit kh.T relayout through the XLU.
    qk_dims = (((1,), (1,)), ((), ()))

    for h in range(num_heads):                      # static, small unroll
        sl = slice(h * head_dim, (h + 1) * head_dim)
        qh, kh, vh = q[:, sl], k[:, sl], v[:, sl]

        s = jax.lax.dot_general(qh, kh, qk_dims,
                                preferred_element_type=jnp.float32)   # (S, S)

        # Numerically stable softmax over keys; normalize via EUP reciprocal.
        s = s - jnp.max(s, axis=-1, keepdims=True)
        p = jnp.exp(s)
        p = p * pl.reciprocal(jnp.sum(p, axis=-1, keepdims=True), approx=True)

        ctx = jnp.dot(p.astype(mxu_dtype), vh,
                      preferred_element_type=jnp.float32)             # (S, d)
        # Write this head's context straight into the merged slab: no
        # concatenate relayout, the head's live ranges end here.
        ctx_ref[:, sl] = ctx

    # Single full-width tanh + store (lane-dense whenever H % 128 == 0).
    o_ref[0] = jnp.tanh(ctx_ref[...]).astype(o_ref.dtype)


def self_attention(x, wq, bq, wk, bk, wv, bv, *, num_heads, mxu_dtype=None):
    """Pallas forward of SelfAttention: tanh(BertSelfAttention(x, 0-mask)[0]).

    x         : (B, S, H)
    wq/wk/wv  : (H, H)  nn.Linear weights in PyTorch (out, in) layout
    bq/bk/bv  : (H,)
    mxu_dtype : optional dtype (e.g. jnp.bfloat16) for the MXU inputs on
                v6e/v7x; accumulation/softmax stay f32, output keeps x.dtype.
    """
    B, S, H = x.shape
    assert H % num_heads == 0
    head_dim = H // num_heads
    out_dtype = x.dtype

    # One-time weight packing: [Wq.T | Wk.T | Wv.T] -> (H, 3H); biases -> (1, 3H).
    wqkv_t = jnp.concatenate([wq.T, wk.T, wv.T], axis=1)
    bqkv = jnp.concatenate([bq, bk, bv]).reshape(1, 3 * H).astype(jnp.float32)

    if mxu_dtype is not None:
        x = x.astype(mxu_dtype)
        wqkv_t = wqkv_t.astype(mxu_dtype)

    kernel = functools.partial(_self_attention_kernel,
                               num_heads=num_heads, head_dim=head_dim)

    grid_spec = pltpu.PrefetchScalarGridSpec(
        num_scalar_prefetch=0,
        grid=(B,),
        in_specs=[
            pl.BlockSpec((1, S, H), lambda b: (b, 0, 0)),    # x
            pl.BlockSpec((H, 3 * H), lambda b: (0, 0)),      # packed Wqkv^T
            pl.BlockSpec((1, 3 * H), lambda b: (0, 0)),      # packed bias
        ],
        out_specs=pl.BlockSpec((1, S, H), lambda b: (b, 0, 0)),
        scratch_shapes=[pltpu.VMEM((S, H), jnp.float32)],
    )

    return pl.pallas_call(
        kernel,
        out_shape=jax.ShapeDtypeStruct((B, S, H), out_dtype),
        grid_spec=grid_spec,
        compiler_params=pltpu.CompilerParams(
            dimension_semantics=("parallel",),       # v7x: shard batch over 2 TCs
            vmem_limit_bytes=32 * 1024 * 1024,       # fits 64 MiB-VMEM v7x too
        ),
    )(x, wqkv_t, bqkv)


def _reference(x, wq, bq, wk, bk, wv, bv, num_heads):
    """Pure-JAX reference mirroring BertSelfAttention + tanh (eval mode)."""
    B, S, H = x.shape
    d = H // num_heads

    def lin(w, b):
        return jnp.einsum('bsh,oh->bso', x, w) + b

    q = lin(wq, bq).reshape(B, S, num_heads, d).transpose(0, 2, 1, 3)
    k = lin(wk, bk).reshape(B, S, num_heads, d).transpose(0, 2, 1, 3)
    v = lin(wv, bv).reshape(B, S, num_heads, d).transpose(0, 2, 1, 3)
    scores = jnp.einsum('bhqd,bhkd->bhqk', q, k) / jnp.sqrt(jnp.float32(d))
    probs = jax.nn.softmax(scores, axis=-1)          # zero attention mask == no-op
    ctx = jnp.einsum('bhqk,bhkd->bhqd', probs, v)
    ctx = ctx.transpose(0, 2, 1, 3).reshape(B, S, H)
    return jnp.tanh(ctx)


if __name__ == "__main__":
    B, S, H, NUM_HEADS = 2, 8, 32, 4   # small config: hidden_size=32, 4 heads

    key = jax.random.PRNGKey(0)
    kx, kq, kk, kv, kbq, kbk, kbv = jax.random.split(key, 7)

    x = jax.random.normal(kx, (B, S, H), dtype=jnp.float32)
    # nn.Linear weights (out, in) and biases (out,), deterministic init.
    wq = 0.05 * jax.random.normal(kq, (H, H), dtype=jnp.float32)
    wk = 0.05 * jax.random.normal(kk, (H, H), dtype=jnp.float32)
    wv = 0.05 * jax.random.normal(kv, (H, H), dtype=jnp.float32)
    bq = 0.05 * jax.random.normal(kbq, (H,), dtype=jnp.float32)
    bk = 0.05 * jax.random.normal(kbk, (H,), dtype=jnp.float32)
    bv = 0.05 * jax.random.normal(kbv, (H,), dtype=jnp.float32)

    ref = _reference(x, wq, bq, wk, bk, wv, bv, NUM_HEADS)

    # f32 MXU-input path (v5e-friendly); approx reciprocal => ~1e-4-level error.
    out = self_attention(x, wq, bq, wk, bk, wv, bv, num_heads=NUM_HEADS)
    out = jax.block_until_ready(out)
    assert out.shape == (B, S, H)
    assert jnp.allclose(out, ref, atol=2e-3, rtol=2e-3), \
        float(jnp.max(jnp.abs(out - ref)))

    # bf16 MXU-input fast path (v6e/v7x feedback); f32 accumulation & softmax.
    out_bf16 = self_attention(x, wq, bq, wk, bk, wv, bv,
                              num_heads=NUM_HEADS, mxu_dtype=jnp.bfloat16)
    out_bf16 = jax.block_until_ready(out_bf16)
    assert out_bf16.shape == (B, S, H)
    assert jnp.allclose(out_bf16, ref, atol=3e-2, rtol=3e-2), \
        float(jnp.max(jnp.abs(out_bf16 - ref)))

    print("KERNEL_OK")
</pallas_src>

<mosaic_0001>
module attributes {stable_mosaic.version = 11 : i64} {
  func.func @_self_attention_kernel(%arg0: i32, %arg1: memref<1x8x32xf32, #tpu.memory_space<vmem>>, %arg2: memref<32x96xf32, #tpu.memory_space<vmem>>, %arg3: memref<1x96xf32, #tpu.memory_space<vmem>>, %arg4: memref<1x8x32xf32, #tpu.memory_space<vmem>>, %arg5: memref<8x32xf32, #tpu.memory_space<vmem>>) attributes {dimension_semantics = [#tpu.dimension_semantics<parallel>], iteration_bounds = array<i64: 2>, scalar_prefetch = 0 : i64, scratch_operands = 1 : i64, tpu.core_type = #tpu.core_type<tc>, window_params = [{transform_indices = @transform_0, window_bounds = array<i64: 1, 8, 32>}, {pipeline_mode = #tpu.pipeline_mode<synchronous>, transform_indices = @transform_1, window_bounds = array<i64: 32, 96>}, {pipeline_mode = #tpu.pipeline_mode<synchronous>, transform_indices = @transform_2, window_bounds = array<i64: 1, 96>}, {transform_indices = @transform_3, window_bounds = array<i64: 1, 8, 32>}]} {
    %c0 = arith.constant 0 : index
    %c0_0 = arith.constant 0 : index
    %c0_1 = arith.constant 0 : index
    %0 = vector.load %arg1[%c0, %c0_0, %c0_1] : memref<1x8x32xf32, #tpu.memory_space<vmem>>, vector<1x8x32xf32>
    %1 = vector.shape_cast %0 : vector<1x8x32xf32> to vector<8x32xf32>
    %c0_2 = arith.constant 0 : index
    %c0_3 = arith.constant 0 : index
    %2 = vector.load %arg2[%c0_2, %c0_3] : memref<32x96xf32, #tpu.memory_space<vmem>>, vector<32x96xf32>
    %cst = arith.constant dense<0.000000e+00> : vector<8x96xf32>
    %3 = tpu.matmul %1, %2, %cst {dimension_numbers = #tpu.dot_dimension_numbers<[1], [0], [0], [1], [0, 0, 1, 1], [], []>} : vector<8x32xf32>, vector<32x96xf32>, vector<8x96xf32> -> vector<8x96xf32>
    %c0_4 = arith.constant 0 : index
    %c0_5 = arith.constant 0 : index
    %4 = vector.load %arg3[%c0_4, %c0_5] : memref<1x96xf32, #tpu.memory_space<vmem>>, vector<1x96xf32>
    %5 = vector.broadcast %4 : vector<1x96xf32> to vector<8x96xf32>
    %6 = arith.addf %3, %5 : vector<8x96xf32>
    %7 = vector.extract_strided_slice %6 {offsets = [0, 0], sizes = [8, 32], strides = [1, 1]} : vector<8x96xf32> to vector<8x32xf32>
    %cst_6 = arith.constant 0.353553385 : f32
    %8 = vector.broadcast %cst_6 : f32 to vector<8x32xf32>
    %9 = arith.mulf %7, %8 : vector<8x32xf32>
    %10 = vector.extract_strided_slice %6 {offsets = [0, 32], sizes = [8, 32], strides = [1, 1]} : vector<8x96xf32> to vector<8x32xf32>
    %11 = vector.extract_strided_slice %6 {offsets = [0, 64], sizes = [8, 32], strides = [1, 1]} : vector<8x96xf32> to vector<8x32xf32>
    %12 = vector.extract_strided_slice %9 {offsets = [0, 0], sizes = [8, 8], strides = [1, 1]} : vector<8x32xf32> to vector<8x8xf32>
    %13 = vector.extract_strided_slice %10 {offsets = [0, 0], sizes = [8, 8], strides = [1, 1]} : vector<8x32xf32> to vector<8x8xf32>
    %14 = vector.extract_strided_slice %11 {offsets = [0, 0], sizes = [8, 8], strides = [1, 1]} : vector<8x32xf32> to vector<8x8xf32>
    %cst_7 = arith.constant dense<0.000000e+00> : vector<8x8xf32>
    %15 = tpu.matmul %12, %13, %cst_7 {dimension_numbers = #tpu.dot_dimension_numbers<[1], [1], [0], [0], [0, 0, 1, 0], [], []>} : vector<8x8xf32>, vector<8x8xf32>, vector<8x8xf32> -> vector<8x8xf32>
    %cst_8 = arith.constant dense<0xFF800000> : vector<8xf32>
    %16 = vector.multi_reduction <maximumf>, %15, %cst_8 [1] : vector<8x8xf32> to vector<8xf32>
    %17 = vector.shape_cast %16 : vector<8xf32> to vector<8x1xf32>
    %18 = vector.broadcast %17 : vector<8x1xf32> to vector<8x8xf32>
    %19 = arith.subf %15, %18 : vector<8x8xf32>
    %20 = math.exp %19 : vector<8x8xf32>
    %cst_9 = arith.constant dense<0.000000e+00> : vector<8xf32>
    %21 = vector.multi_reduction <add>, %20, %cst_9 [1] : vector<8x8xf32> to vector<8xf32>
    %22 = vector.shape_cast %21 : vector<8xf32> to vector<8x1xf32>
    %23 = tpu.reciprocal %22 {approx = true} : vector<8x1xf32> -> vector<8x1xf32>
    %24 = vector.broadcast %23 : vector<8x1xf32> to vector<8x8xf32>
    %25 = arith.mulf %20, %24 : vector<8x8xf32>
    %cst_10 = arith.constant dense<0.000000e+00> : vector<8x8xf32>
    %26 = tpu.matmul %25, %14, %cst_10 {dimension_numbers = #tpu.dot_dimension_numbers<[1], [0], [0], [1], [0, 0, 1, 1], [], []>} : vector<8x8xf32>, vector<8x8xf32>, vector<8x8xf32> -> vector<8x8xf32>
    %c0_11 = arith.constant 0 : index
    %c0_12 = arith.constant 0 : index
    %27 = vector.load %arg5[%c0_11, %c0_12] : memref<8x32xf32, #tpu.memory_space<vmem>>, vector<8x8xf32>
    tpu.vector_store %arg5[%c0_11, %c0_12], %26 {strides = array<i32>} : memref<8x32xf32, #tpu.memory_space<vmem>>, vector<8x8xf32>,
    %28 = vector.extract_strided_slice %9 {offsets = [0, 8], sizes = [8, 8], strides = [1, 1]} : vector<8x32xf32> to vector<8x8xf32>
    %29 = vector.extract_strided_slice %10 {offsets = [0, 8], sizes = [8, 8], strides = [1, 1]} : vector<8x32xf32> to vector<8x8xf32>
    %30 = vector.extract_strided_slice %11 {offsets = [0, 8], sizes = [8, 8], strides = [1, 1]} : vector<8x32xf32> to vector<8x8xf32>
    %cst_13 = arith.constant dense<0.000000e+00> : vector<8x8xf32>
    %31 = tpu.matmul %28, %29, %cst_13 {dimension_numbers = #tpu.dot_dimension_numbers<[1], [1], [0], [0], [0, 0, 1, 0], [], []>} : vector<8x8xf32>, vector<8x8xf32>, vector<8x8xf32> -> vector<8x8xf32>
    %cst_14 = arith.constant dense<0xFF800000> : vector<8xf32>
    %32 = vector.multi_reduction <maximumf>, %31, %cst_14 [1] : vector<8x8xf32> to vector<8xf32>
    %33 = vector.shape_cast %32 : vector<8xf32> to vector<8x1xf32>
    %34 = vector.broadcast %33 : vector<8x1xf32> to vector<8x8xf32>
    %35 = arith.subf %31, %34 : vector<8x8xf32>
    %36 = math.exp %35 : vector<8x8xf32>
    %cst_15 = arith.constant dense<0.000000e+00> : vector<8xf32>
    %37 = vector.multi_reduction <add>, %36, %cst_15 [1] : vector<8x8xf32> to vector<8xf32>
    %38 = vector.shape_cast %37 : vector<8xf32> to vector<8x1xf32>
    %39 = tpu.reciprocal %38 {approx = true} : vector<8x1xf32> -> vector<8x1xf32>
    %40 = vector.broadcast %39 : vector<8x1xf32> to vector<8x8xf32>
    %41 = arith.mulf %36, %40 : vector<8x8xf32>
    %cst_16 = arith.constant dense<0.000000e+00> : vector<8x8xf32>
    %42 = tpu.matmul %41, %30, %cst_16 {dimension_numbers = #tpu.dot_dimension_numbers<[1], [0], [0], [1], [0, 0, 1, 1], [], []>} : vector<8x8xf32>, vector<8x8xf32>, vector<8x8xf32> -> vector<8x8xf32>
    %c0_17 = arith.constant 0 : index
    %c8 = arith.constant 8 : index
    %43 = vector.load %arg5[%c0_17, %c8] : memref<8x32xf32, #tpu.memory_space<vmem>>, vector<8x8xf32>
    tpu.vector_store %arg5[%c0_17, %c8], %42 {strides = array<i32>} : memref<8x32xf32, #tpu.memory_space<vmem>>, vector<8x8xf32>,
    %44 = vector.extract_strided_slice %9 {offsets = [0, 16], sizes = [8, 8], strides = [1, 1]} : vector<8x32xf32> to vector<8x8xf32>
    %45 = vector.extract_strided_slice %10 {offsets = [0, 16], sizes = [8, 8], strides = [1, 1]} : vector<8x32xf32> to vector<8x8xf32>
    %46 = vector.extract_strided_slice %11 {offsets = [0, 16], sizes = [8, 8], strides = [1, 1]} : vector<8x32xf32> to vector<8x8xf32>
    %cst_18 = arith.constant dense<0.000000e+00> : vector<8x8xf32>
    %47 = tpu.matmul %44, %45, %cst_18 {dimension_numbers = #tpu.dot_dimension_numbers<[1], [1], [0], [0], [0, 0, 1, 0], [], []>} : vector<8x8xf32>, vector<8x8xf32>, vector<8x8xf32> -> vector<8x8xf32>
    %cst_19 = arith.constant dense<0xFF800000> : vector<8xf32>
    %48 = vector.multi_reduction <maximumf>, %47, %cst_19 [1] : vector<8x8xf32> to vector<8xf32>
    %49 = vector.shape_cast %48 : vector<8xf32> to vector<8x1xf32>
    %50 = vector.broadcast %49 : vector<8x1xf32> to vector<8x8xf32>
    %51 = arith.subf %47, %50 : vector<8x8xf32>
    %52 = math.exp %51 : vector<8x8xf32>
    %cst_20 = arith.constant dense<0.000000e+00> : vector<8xf32>
    %53 = vector.multi_reduction <add>, %52, %cst_20 [1] : vector<8x8xf32> to vector<8xf32>
    %54 = vector.shape_cast %53 : vector<8xf32> to vector<8x1xf32>
    %55 = tpu.reciprocal %54 {approx = true} : vector<8x1xf32> -> vector<8x1xf32>
    %56 = vector.broadcast %55 : vector<8x1xf32> to vector<8x8xf32>
    %57 = arith.mulf %52, %56 : vector<8x8xf32>
    %cst_21 = arith.constant dense<0.000000e+00> : vector<8x8xf32>
    %58 = tpu.matmul %57, %46, %cst_21 {dimension_numbers = #tpu.dot_dimension_numbers<[1], [0], [0], [1], [0, 0, 1, 1], [], []>} : vector<8x8xf32>, vector<8x8xf32>, vector<8x8xf32> -> vector<8x8xf32>
    %c0_22 = arith.constant 0 : index
    %c16 = arith.constant 16 : index
    %59 = vector.load %arg5[%c0_22, %c16] : memref<8x32xf32, #tpu.memory_space<vmem>>, vector<8x8xf32>
    tpu.vector_store %arg5[%c0_22, %c16], %58 {strides = array<i32>} : memref<8x32xf32, #tpu.memory_space<vmem>>, vector<8x8xf32>,
    %60 = vector.extract_strided_slice %9 {offsets = [0, 24], sizes = [8, 8], strides = [1, 1]} : vector<8x32xf32> to vector<8x8xf32>
    %61 = vector.extract_strided_slice %10 {offsets = [0, 24], sizes = [8, 8], strides = [1, 1]} : vector<8x32xf32> to vector<8x8xf32>
    %62 = vector.extract_strided_slice %11 {offsets = [0, 24], sizes = [8, 8], strides = [1, 1]} : vector<8x32xf32> to vector<8x8xf32>
    %cst_23 = arith.constant dense<0.000000e+00> : vector<8x8xf32>
    %63 = tpu.matmul %60, %61, %cst_23 {dimension_numbers = #tpu.dot_dimension_numbers<[1], [1], [0], [0], [0, 0, 1, 0], [], []>} : vector<8x8xf32>, vector<8x8xf32>, vector<8x8xf32> -> vector<8x8xf32>
    %cst_24 = arith.constant dense<0xFF800000> : vector<8xf32>
    %64 = vector.multi_reduction <maximumf>, %63, %cst_24 [1] : vector<8x8xf32> to vector<8xf32>
    %65 = vector.shape_cast %64 : vector<8xf32> to vector<8x1xf32>
    %66 = vector.broadcast %65 : vector<8x1xf32> to vector<8x8xf32>
    %67 = arith.subf %63, %66 : vector<8x8xf32>
    %68 = math.exp %67 : vector<8x8xf32>
    %cst_25 = arith.constant dense<0.000000e+00> : vector<8xf32>
    %69 = vector.multi_reduction <add>, %68, %cst_25 [1] : vector<8x8xf32> to vector<8xf32>
    %70 = vector.shape_cast %69 : vector<8xf32> to vector<8x1xf32>
    %71 = tpu.reciprocal %70 {approx = true} : vector<8x1xf32> -> vector<8x1xf32>
    %72 = vector.broadcast %71 : vector<8x1xf32> to vector<8x8xf32>
    %73 = arith.mulf %68, %72 : vector<8x8xf32>
    %cst_26 = arith.constant dense<0.000000e+00> : vector<8x8xf32>
    %74 = tpu.matmul %73, %62, %cst_26 {dimension_numbers = #tpu.dot_dimension_numbers<[1], [0], [0], [1], [0, 0, 1, 1], [], []>} : vector<8x8xf32>, vector<8x8xf32>, vector<8x8xf32> -> vector<8x8xf32>
    %c0_27 = arith.constant 0 : index
    %c24 = arith.constant 24 : index
    %75 = vector.load %arg5[%c0_27, %c24] : memref<8x32xf32, #tpu.memory_space<vmem>>, vector<8x8xf32>
    tpu.vector_store %arg5[%c0_27, %c24], %74 {strides = array<i32>} : memref<8x32xf32, #tpu.memory_space<vmem>>, vector<8x8xf32>,
    %c0_28 = arith.constant 0 : index
    %c0_29 = arith.constant 0 : index
    %76 = vector.load %arg5[%c0_28, %c0_29] : memref<8x32xf32, #tpu.memory_space<vmem>>, vector<8x32xf32>
    %77 = math.tanh %76 : vector<8x32xf32>
    %c0_30 = arith.constant 0 : index
    %c0_31 = arith.constant 0 : index
    %c0_32 = arith.constant 0 : index
    %78 = vector.load %arg4[%c0_30, %c0_31, %c0_32] : memref<1x8x32xf32, #tpu.memory_space<vmem>>, vector<1x8x32xf32>
    %79 = vector.shape_cast %78 : vector<1x8x32xf32> to vector<8x32xf32>
    %80 = vector.shape_cast %77 : vector<8x32xf32> to vector<1x8x32xf32>
    tpu.vector_store %arg4[%c0_30, %c0_31, %c0_32], %80 {strides = array<i32>} : memref<1x8x32xf32, #tpu.memory_space<vmem>>, vector<1x8x32xf32>,
    return
  }
  func.func @transform_0(%arg0: i32) -> (i32, i32, i32) {
    %c0_i32 = arith.constant 0 : i32
    %c0_i32_0 = arith.constant 0 : i32
    %c0_i32_1 = arith.constant 0 : i32
    return %arg0, %c0_i32, %c0_i32_0 : i32, i32, i32
  }
  func.func @transform_1(%arg0: i32) -> (i32, i32) {
    %c0_i32 = arith.constant 0 : i32
    %c0_i32_0 = arith.constant 0 : i32
    %c0_i32_1 = arith.constant 0 : i32
    return %c0_i32, %c0_i32_0 : i32, i32
  }
  func.func @transform_2(%arg0: i32) -> (i32, i32) {
    %c0_i32 = arith.constant 0 : i32
    %c0_i32_0 = arith.constant 0 : i32
    %c0_i32_1 = arith.constant 0 : i32
    return %c0_i32, %c0_i32_0 : i32, i32
  }
  func.func @transform_3(%arg0: i32) -> (i32, i32, i32) {
    %c0_i32 = arith.constant 0 : i32
    %c0_i32_0 = arith.constant 0 : i32
    %c0_i32_1 = arith.constant 0 : i32
    return %arg0, %c0_i32, %c0_i32_0 : i32, i32, i32
  }
}

</mosaic_0001>

<bundles_post_ra>
// kernel: tpu_custom_call.1
= control target key start
LH: loop header
LB: loop body
LE: loop exit
PB: predicated region body
PF: predicated region fallthrough
CT: control target
= control target key end

     0   :  { %8 = vsyncpa [#allocation4], 0  ;;  %s1083_s0 = inlined_call_operand.hbm [shape: f32[2,8,32], index: 0, kind: input, shape index: {}]   ;;  %s1084_s1 = inlined_call_operand.hbm [shape: f32[32,96], index: 1, kind: input, shape index: {}]   ;;  %s1085_s2 = inlined_call_operand.vmem [shape: f32[1,96], index: 2, kind: input, shape index: {}]   ;;  %s1086_s3 = inlined_call_operand.hbm [shape: f32[2,8,32], index: 3, kind: output, shape index: {}]  }
   0x1   :  { %10 = vsyncpa [#allocation4 + $0x1], 0 }
   0x2   :  { %11 = vsyncpa [#allocation7], 0 }
   0x3   :  { %12 = vsyncpa [#allocation5], 0 }
   0x4   :  { %14 = vsyncpa [#allocation5 + $0x1], 0  ;;  %s906_s12 = smov 0   ;;  %s908_s13 = smov 0  }
   0x5   :  { %s910_s14 = smov 0   ;;  %s912_s15 = smov 0  }
   0x6 LB: > { %s130_s18 = sshll.u32 %s1084_s1, 4  ;;  %s930_s19 = sadd.s32 4294967295, %s867_s15   ;;  %s867_s15 = sphi %s912_s15, %s1096_s15   ;;  %s863_s14 = sphi %s910_s14, %s1095_s14   ;;  %s859_s13 = sphi %s908_s13, %s1094_s13   ;;  %s855_s12 = sphi %s906_s12, %s1093_s12   ;;  %s131_s18 = int_to_ptr.hbm [resolvable:$true] %s130_s18 }
   0x7   : > { %p619_p0 = scmp.ge.s32.totalorder %s867_s15, 1  ;;  %p41_p1 = scmp.eq.s32.totalorder %s930_s19, 0 }
   0x8   : > { %p119_p2 = scmp.lt.s32.totalorder %s867_s15, 3  ;;  %s869_s21 = smov [#allocation6]  }
   0x9   : > { %s132_s22 = sshll.u32 %s869_s21, 4  ;;  %s870_s23 = smov 128   ;;  %s133_s22 = int_to_ptr.vmem [resolvable:$true] %s132_s22 }
   0xa   : > { %p935_p3 = pnand %p619_p0, %p119_p2  ;;  %s871_s24 = smov 8  }
   0xb   : > { %s618_s25 = sadd.s32 4294967294, %s867_s15   ;;  %s946_s26 = sadd.s32 1, %s867_s15  }
   0xc   : > { %p653_p4 = pneg %p935_p3  ;;  %s27_s27 = sadd.s32 1, %s863_s14 }
   0xd   : > { %s24_s28 = ssub.s32 %s867_s15, %s946_s26  ;;  %p34_p7 = scmp.ne.s32.totalorder %s863_s14, %s859_s13 }
   0xe   : > { %p654_p6 = pnand %p653_p4, %p41_p1  ;;  %p25_p8 = scmp.eq.s32.totalorder %s24_s28, 0 }
   0xf   : > { %p35_p9 = scmp.eq.s32.totalorder %s867_s15, 0  ;;  %p40_p10 = scmp.ne.s32.totalorder %s859_s13, %s855_s12 }
  0x10   : > { %656 = dma.hbm_to_vmem [thread:$0]  (!%p654_p6), %s131_s18, 512, %s133_s22, [#allocation7], %s870_s23, %s870_s23, %s871_s24  }
  0x11   : > { %p106_p11 = scmp.eq.s32.totalorder %s930_s19, 1  ;;  %p962_p12 = por %p41_p1, %p40_p10 }
  0x12   : > { %s958_s29 = scalar_select %p25_p8, %s863_s14, %s27_s27  }
  0x13   : > { %p966_p13 = por %p106_p11, %p34_p7  ;;  %p112_p0 = scmp.eq.s32.totalorder %s618_s25, 1 }
  0x14   : > { %p36_p2 = por %p35_p9, %p34_p7  ;;  %s149_s5 = sand.u32 1, %s863_s14  }
  0x15   : > { %p971_p4 = por %p112_p0, %p40_p10  ;;  %p666_p6 = scmp.lt.s32.totalorder %s867_s15, 2 }
  0x16   : > { %s622_s7 = sshll.u32 %s149_s5, 3  ;;  %s623_s8 = sshll.u32 %s867_s15, 3 }
  0x17   : > { %s157_s11 = scalar_lea.hbm %s1083_s0, %s623_s8  ;;  %s153_s17 = scalar_lea.vmem [#allocation3], %s622_s7 }
  0x18   : > { %s159_s16 = sshll.u32 %s157_s11, 4  ;;  %s161_s18 = sshll.u32 %s153_s17, 4  ;;  %s160_s16 = int_to_ptr.hbm [resolvable:$true] %s159_s16  ;;  %s162_s18 = int_to_ptr.vmem [resolvable:$true] %s161_s18 }
  0x19   : > { %p980_p8 = pnand %p666_p6, %p36_p2  ;;  %s150_s22 = scalar_lea.sflag [#allocation4], %s149_s5 }
  0x1a   : > { %s767_s23 = sshra.s32 %s160_s16, 4  ;;  %s774_s28 = scalar_lea.hbm %s1083_s0, 16  ;;  %s768_s23 = int_to_ptr.hbm [resolvable:$true] %s767_s23 }
  0x1b   : > { %s769_s24 = scalar_lea.hbm %s768_s23, 8  ;;  %p771_p9 = pneg %p980_p8 }
  0x1c   : > { %p770_p7 = scmp.ne.s32.totalorder %s768_s23, %s769_s24  ;;  %p775_p0 = scmp.lt.s32.totalorder %s768_s23, %s1083_s0 }
  0x1d   : > { %p776_p2 = scmp.lt.s32.totalorder %s774_s28, %s769_s24 }
  0x1e   : > { %p772_p10 = pnand %p771_p9, %p770_p7 }
  0x1f   : > { %p777_p6 = por %p776_p2, %p775_p0 }
  0x20   : > { %p773_p11 = pneg %p772_p10 }
  0x22   : > { %p778_p5 = pnand %p777_p6, %p773_p11 }
  0x24   : > { %781 = shalt.err (!%p778_p5)
}
  0x25   : > { %660 = dma.hbm_to_vmem [thread:$0]  (!%p980_p8), %s160_s16, 128, %s162_s18, %s150_s22  }
  0x26   : > { %170 = sbr.rel (%p935_p3) target bundleno = 983 (0x3d7), region = 32  ;;  %s997_s5 = sand.u32 (!%p935_p3), 1, %s859_s13  }
  0x27   : > { %s625_s9 = sshll.u32 (!%p935_p3), %s997_s5, 3  ;;  %s173_s10 = scalar_lea.sflag (!%p935_p3), [#allocation4], %s997_s5 }
  0x28   : > { %s176_s11 = scalar_lea.vmem (!%p935_p3), [#allocation3], %s625_s9 }
  0x2b   : > { %842 = dma.done.wait (%p962_p12), %s173_s10, 128  }
  0x2c   : > { %844 = vsyncadd (%p962_p12), %s173_s10, 4294967168 }
  0x2d   : > { %846 = dma.done.wait (%p41_p1), [#allocation7], 512  }
  0x2e   : > { %848 = vsyncadd (%p41_p1), [#allocation7], 4294966784  ;;  %v209_v0 = vld [vmem:[#allocation6 + $0x18] sm:$0xff]  ;;  %v208_v1 = vld [vmem:[#allocation6 + $0x10] sm:$0xff]  ;;  %vm214_vm0 = vcmask 261120   ;;  %s872_s16 = smov 72  }
  0x2f   : > { %230 = vmatpush.msra.mxu0 %v209_v0  ;;  %v207_v2 = vld [vmem:[#allocation6 + $0x8] sm:$0xff]  ;;  %v206_v3 = vld [vmem:[#allocation6] sm:$0xff]  ;;  %v205_v4 = vld [vmem:[%s176_s11] sm:$0xff]  ;;  %s873_s17 = smov 96   ;;  %s874_s18 = smov 120   ;;  %vm242_vm1 = vcmask 64512  }
  0x30   : > { %v718_v5 = vld [vmem:[%s1085_s2] ss:$0 sm:$0xff]  ;;  %s875_s21 = smov 88   ;;  %s876_s22 = smov 112   ;;  %vm375_vm2 = vcmask 130112   ;;  %vm446_vm3 = vcmask 195712  }
  0x31   : > { %231 = vmatpush.msra.mxu0 %v208_v1  ;;  %s877_s23 = smov 80   ;;  %s878_s24 = smov 104   ;;  %vm517_vm4 = vcmask 261312  }
  0x32   : > { %s879_s25 = smov 64   ;;  %s880_s27 = smov 40  }
  0x33   : > { %232 = vmatpush.msra.mxu0 %v207_v2  ;;  %s881_s28 = smov 56   ;;  %s882_s7 = smov 48  }
  0x34   : > { %s883_s8 = smov 16   ;;  %s884_s10 = smov 8  }
  0x35   : > { %233 = vmatpush.msra.mxu0 %v206_v3  ;;  %s885_s11 = smov 24   ;;  %s642_s20 = sshll.u32 %s930_s19, 3 }
  0x36   : > { %628 = vmatmul.msk.f32.vlgmr.msra.gmra.mxu0 %vm214_vm0, %v205_v4 }
  0xb3   : > { %v235_v6 = vpop.f32.mrf.mxu0 }
  0xb4   : > { %v1015_v7 = vadd.f32 %v718_v5, %v235_v6 }
  0xb6   : > { %450 = vrot.lane.b32.xlu2 %v1015_v7, %s872_s16  ;;  %240 = vrot.lane.b32.xlu0 %v1015_v7, %s873_s17  ;;  %v238_v8 = vmul.f32 0.35355338, %v1015_v7  ;;  %s533_s17 = scalar_lea.hbm %s1086_s3, %s642_s20 }
  0xb8   : > { %306 = vrot.lane.b32.xlu1 %v238_v8, %s874_s18  ;;  %s204_s18 = scalar_lea.vmem [#allocation8], %s625_s9 }
  0xbe   : > { %308 = vrot.lane.b32.xlu0 %v1015_v7, %s875_s21  ;;  %377 = vrot.lane.b32.xlu2 %v238_v8, %s876_s22  ;;  %s535_s21 = sshll.u32 %s204_s18, 4  ;;  %s537_s22 = sshll.u32 %s533_s17, 4  ;;  %s536_s21 = int_to_ptr.vmem [resolvable:$true] %s535_s21  ;;  %s538_s22 = int_to_ptr.hbm [resolvable:$true] %s537_s22 }
  0xc0   : > { %379 = vrot.lane.b32.xlu1 %v1015_v7, %s877_s23  ;;  %s523_s23 = scalar_lea.sflag [#allocation5], %s997_s5 }
  0xc6   : > { %448 = vrot.lane.b32.xlu0 %v238_v8, %s878_s24  ;;  %s811_s24 = sshra.s32 %s538_s22, 4  ;;  %s812_s24 = int_to_ptr.hbm [resolvable:$true] %s811_s24 }
  0xc7   : > { %s813_s19 = scalar_lea.hbm %s812_s24, 8  ;;  %p818_p12 = scmp.lt.s32.totalorder %s812_s24, %s1086_s3 }
  0xc8   : > { %p814_p1 = scmp.ne.s32.totalorder %s812_s24, %s813_s19 }
  0xca   : > { %p815_p3 = pnand %p814_p1, %p966_p13 }
  0xcc   : > { %p816_p5 = pneg %p815_p3 }
 0x110   : > { %v451_v9 = vpop.permute.xlu2 %450 }
 0x111   : > { %638 = vmatpush.xpose.msk.msrb.mxu0 %vm242_vm1, %v451_v9 }
 0x118   : > { %v378_v14 = vpop.permute.xlu2 %377 }
 0x128   : > { %v241_v10 = vpop.permute.xlu0 %240 }
 0x129   : > { %629 = vmatpush.xpose.msk.msra.mxu1 %vm242_vm1, %v241_v10 }
 0x12a   : > { %v307_v11 = vpop.permute.xlu1 %306 }
 0x12c   : > { %630 = vmatmul.msk.f32.vlgmr.msra.gmra.mxu1 %vm242_vm1, %v238_v8 }
 0x130   : > { %v309_v12 = vpop.permute.xlu0 %308 }
 0x131   : > { %632 = vmatpush.xpose.msk.msra.mxu3 %vm242_vm1, %v309_v12 }
 0x132   : > { %v380_v13 = vpop.permute.xlu1 %379 }
 0x133   : > { %635 = vmatpush.xpose.msk.msrb.mxu1 %vm242_vm1, %v380_v13 }
 0x134   : > { %633 = vmatmul.msk.f32.vlgmr.msra.gmra.mxu3 %vm242_vm1, %v307_v11 }
 0x136   : > { %636 = vmatmul.msk.f32.vlgmr.msrb.gmra.mxu1 %vm242_vm1, %v378_v14 }
 0x138   : > { %v449_v15 = vpop.permute.xlu0 %448 }
 0x139   : > { %639 = vmatmul.msk.f32.vlgmr.msrb.gmra.mxu0 %vm242_vm1, %v449_v15 }
 0x1a9   : > { %v265_v16 = vpop.f32.mrf.mxu1 }
 0x1aa   : > { %v268_v17 = vsel %vm242_vm1, %v265_v16, -inf }
 0x1ab   : > { %269 = vmax.xlane.f32.xlu1 %v268_v17 }
 0x1b3   : > { %v402_v18 = vpop.f32.mrf.mxu1 }
 0x1b4   : > { %v405_v19 = vsel %vm242_vm1, %v402_v18, -inf }
 0x1b5   : > { %406 = vmax.xlane.f32.xlu0 %v405_v19 }
 0x1b6   : > { %v473_v22 = vpop.f32.mrf.mxu0 }
 0x1b7   : > { %v331_v20 = vpop.f32.mrf.mxu3  ;;  %v476_v23 = vsel %vm242_vm1, %v473_v22, -inf }
 0x1b8   : > { %v334_v21 = vsel %vm242_vm1, %v331_v20, -inf }
 0x1b9   : > { %335 = vmax.xlane.f32.xlu2 %v334_v21 }
 0x1c1   : > { %477 = vmax.xlane.f32.xlu2 %v476_v23 }
 0x1c9   : > { %279 = vrot.lane.b32.xlu0 %v1015_v7, %s879_s25 }
 0x1d1   : > { %487 = vrot.lane.b32.xlu0 %v1015_v7, %s880_s27 }
 0x21e   : > { %v270_v24 = vpop.xlane.xlu1 %269 }
 0x21f   : > { %v271_v25 = vsub.f32 %v265_v16, %v270_v24 }
 0x221   : > { %v272_v26 = vmul.f32 1.442695, %v271_v25 }
 0x223   : > { %719 = vpow2.f32 %v272_v26 }
 0x228   : > { %v407_v27 = vpop.xlane.xlu0 %406 }
 0x229   : > { %v720_v28 = vpop.eup %719  ;;  %v408_v29 = vsub.f32 %v402_v18, %v407_v27 }
 0x22a   : > { %v274_v30 = vsel %vm242_vm1, %v720_v28, 0.0 }
 0x22b   : > { %v409_v31 = vmul.f32 1.442695, %v408_v29  ;;  %275 = vadd.xlane.f32.xlu1 %v274_v30 }
 0x22c   : > { %v336_v32 = vpop.xlane.xlu2 %335 }
 0x22d   : > { %721 = vpow2.f32 %v409_v31  ;;  %v337_v37 = vsub.f32 %v331_v20, %v336_v32 }
 0x22f   : > { %v338_v39 = vmul.f32 1.442695, %v337_v37 }
 0x233   : > { %v722_v33 = vpop.eup %721 }
 0x234   : > { %v478_v34 = vpop.xlane.xlu2 %477  ;;  %v411_v35 = vsel %vm242_vm1, %v722_v33, 0.0 }
 0x235   : > { %v479_v36 = vsub.f32 %v473_v22, %v478_v34  ;;  %412 = vadd.xlane.f32.xlu1 %v411_v35 }
 0x237   : > { %v480_v38 = vmul.f32 1.442695, %v479_v36 }
 0x239   : > { %723 = vpow2.f32 %v480_v38 }
 0x23a   : > { %725 = vpow2.f32 %v338_v39 }
 0x23b   : > { %v280_v40 = vpop.permute.xlu0 %279 }
 0x23c   : > { %300 = vmatpush.msra.mxu2 %v280_v40 }
 0x23f   : > { %v724_v41 = vpop.eup %723 }
 0x240   : > { %v482_v42 = vsel %vm242_vm1, %v724_v41, 0.0  ;;  %v726_v43 = vpop.eup %725 }
 0x241   : > { %483 = vadd.xlane.f32.xlu2 %v482_v42  ;;  %v340_v44 = vsel %vm242_vm1, %v726_v43, 0.0 }
 0x243   : > { %v488_v53 = vpop.permute.xlu0 %487 }
 0x249   : > { %341 = vadd.xlane.f32.xlu2 %v340_v44 }
 0x24e   : > { %345 = vrot.lane.b32.xlu1 %v1015_v7, %s881_s28  ;;  %s817_s28 = scalar_lea.hbm %s1086_s3, 16 }
 0x24f   : > { %p819_p8 = scmp.lt.s32.totalorder %s817_s28, %s813_s19 }
 0x251   : > { %p820_p7 = por %p819_p8, %p818_p12 }
 0x253   : > { %p821_p9 = pnand %p820_p7, %p816_p5 }
 0x261   : > { %416 = vrot.lane.b32.xlu2 %v1015_v7, %s882_s7 }
 0x29e   : > { %v276_v45 = vpop.xlane.xlu1 %275 }
 0x29f   : > { %727 = vrcp.f32 %v276_v45 }
 0x2a5   : > { %v728_v46 = vpop.eup %727 }
 0x2a6   : > { %v278_v47 = vmul.f32 %v728_v46, %v720_v28 }
 0x2a8   : > { %631 = vmatmul.msk.f32.vlgmr.msra.gmra.mxu2 %vm242_vm1, %v278_v47  ;;  %v413_v49 = vpop.xlane.xlu1 %412 }
 0x2a9   : > { %729 = vrcp.f32 %v413_v49 }
 0x2af   : > { %v730_v52 = vpop.eup %729 }
 0x2b0   : > { %v415_v57 = vmul.f32 %v730_v52, %v722_v33 }
 0x2b4   : > { %v484_v48 = vpop.xlane.xlu2 %483 }
 0x2bc   : > { %v342_v50 = vpop.xlane.xlu2 %341 }
 0x2bd   : > { %731 = vrcp.f32 %v342_v50 }
 0x2be   : > { %733 = vrcp.f32 %v484_v48 }
 0x2c0   : > { %v346_v51 = vpop.permute.xlu1 %345 }
 0x2c1   : > { %366 = vmatpush.msrb.mxu2 %v346_v51 }
 0x2c3   : > { %508 = vmatpush.msra.mxu2 %v488_v53  ;;  %v732_v54 = vpop.eup %731 }
 0x2c4   : > { %v417_v55 = vpop.permute.xlu2 %416  ;;  %v344_v56 = vmul.f32 %v732_v54, %v726_v43  ;;  %v734_v58 = vpop.eup %733 }
 0x2c5   : > { %437 = vmatpush.msrb.mxu3 %v417_v55  ;;  %v486_v59 = vmul.f32 %v734_v58, %v724_v41 }
 0x2c6   : > { %634 = vmatmul.msk.f32.vlgmr.msrb.gmra.mxu2 %vm242_vm1, %v344_v56  ;;  %637 = vmatmul.msk.f32.vlgmr.msrb.gmra.mxu3 %vm242_vm1, %v415_v57 }
 0x2ce   : > { %640 = vmatmul.msk.f32.vlgmr.msra.gmra.mxu2 %vm242_vm1, %v486_v59 }
 0x32b   : > { %v302_v60 = vpop.f32.mrf.mxu2 }
 0x32c   : > { %305 = vst.msk [vmem:[#allocation2] sm:$0xff] %vm242_vm1, %v302_v60 }
 0x349   : > { %v368_v61 = vpop.f32.mrf.mxu2  ;;  %v439_v62 = vpop.f32.mrf.mxu3 }
 0x34a   : > { %443 = vrot.lane.b32.xlu1 %v439_v62, %s883_s8  ;;  %372 = vrot.lane.b32.xlu0 %v368_v61, %s884_s10 }
 0x351   : > { %v510_v63 = vpop.f32.mrf.mxu2 }
 0x352   : > { %514 = vrot.lane.b32.xlu0 %v510_v63, %s885_s11 }
 0x3bc   : > { %v373_v0 = vpop.permute.xlu0 %372  ;;  %v444_v1 = vpop.permute.xlu1 %443 }
 0x3bd   : > { %376 = vst.msk [vmem:[#allocation2] sm:$0xff] %vm375_vm2, %v373_v0 }
 0x3be   : > { %447 = vst.msk [vmem:[#allocation2] sm:$0xff] %vm446_vm3, %v444_v1 }
 0x3c4   : > { %v515_v2 = vpop.permute.xlu0 %514 }
 0x3c5   : > { %518 = vst.msk [vmem:[#allocation2] sm:$0xff] %vm517_vm4, %v515_v2 }
 0x3cc   : > { %v519_v3 = vld [vmem:[#allocation2] sm:$0xff] }
 0x3cd   : > { %735 = vtanh.f32 %v519_v3 }
 0x3d3   : > { %v736_v4 = vpop.eup %735 }
 0x3d4   : > { %521 = vst.msk [vmem:[%s204_s18] sm:$0xff] %vm214_vm0, %v736_v4 }
 0x3d5   : > { %824 = shalt.err (!%p821_p9)
}
 0x3d6   : > { %651 = dma.vmem_to_hbm [thread:$0]  (%p966_p13), %s536_s21, 128, %s538_s22, %s523_s23  }
 0x3d7 PF: > { %s549_s5 = sand.u32 1, %s855_s12   ;;  %p1092_p10 = scmp.ge.s32.totalorder %s867_s15, 2 }
 0x3d8   : > { %s550_s8 = scalar_lea.sflag [#allocation5], %s549_s5 }
 0x3d9   : > { %p662_p11 = pnand %p1092_p10, %p971_p4 }
 0x3db   : > { %p663_p0 = pneg %p662_p11 }
 0x3dd   : > { %850 = dma.done.wait (%p663_p0), %s550_s8, 128  }
 0x3de   : > { %852 = vsyncadd (%p663_p0), %s550_s8, 4294967168  ;;  %p17_p2 = scmp.ge.s32.totalorder %s946_s26, 4   ;;  %s1093_s12 = smov %s859_s13 }
 0x3df   : > { %s1094_s13 = smov %s863_s14  ;;  %s1095_s14 = smov %s958_s29 }
 0x3e0   : > { %s1096_s15 = smov %s946_s26  ;;  %19 = sbr.rel (!%p17_p2) target bundleno = 6 (0x6), region = 81 }
 0x3e5   :  { %556 = vsyncpa [#allocation4], 1 }
 0x3e6   :  { %558 = vsyncpa [#allocation4 + $0x1], 1 }
 0x3e7   :  { %559 = vsyncpa [#allocation7], 1 }
 0x3e8   :  { %560 = vsyncpa [#allocation5], 1 }
 0x3e9   :  { %562 = vsyncpa [#allocation5 + $0x1], 1 }

</bundles_post_ra>
